<compile_context>
chip_gen: v7x
topology: tpu7x:2x2x1
jax: 0.10.0
libtpu: 0.0.40
codegen_flags: <defaults>
</compile_context>

<pallas_src>
import functools

import jax
import jax.numpy as jnp
from jax.experimental import pallas as pl
from jax.experimental.pallas import tpu as pltpu


# ----------------------------------------------------------------------------
# Pallas kernel: tiled matmul + per-channel affine (+ residual) (+ ReLU)
# ----------------------------------------------------------------------------
def _make_mm_kernel(relu: bool, has_res: bool, has_scale: bool):
    def kernel(*refs):
        idx = 0
        a_ref = refs[idx]; idx += 1
        w_ref = refs[idx]; idx += 1
        s_ref = None
        if has_scale:
            s_ref = refs[idx]; idx += 1
        b_ref = refs[idx]; idx += 1
        r_ref = None
        if has_res:
            r_ref = refs[idx]; idx += 1
        o_ref = refs[idx]; idx += 1
        acc_ref = refs[idx]

        k = pl.program_id(2)

        @pl.when(k == 0)
        def _():
            acc_ref[...] = jnp.zeros_like(acc_ref)

        acc_ref[...] += jnp.dot(
            a_ref[...], w_ref[...], preferred_element_type=jnp.float32
        )

        @pl.when(k == pl.num_programs(2) - 1)
        def _():
            out = acc_ref[...]
            if s_ref is not None:
                out = out * s_ref[...]
            out = out + b_ref[...]
            if r_ref is not None:
                out = out + r_ref[...]
            if relu:
                out = jnp.maximum(out, 0.0)
            o_ref[...] = out.astype(o_ref.dtype)

    return kernel


def _round_up(x, m):
    return ((x + m - 1) // m) * m


def _pick_tile(dim_padded, cap, align):
    """Largest multiple of `align` that divides dim_padded and is <= cap."""
    best = align
    t = align
    limit = min(cap, dim_padded)
    while t <= limit:
        if dim_padded % t == 0:
            best = t
        t += align
    return best


def matmul_affine(a, w, bias, scale=None, residual=None, relu=False):
    """out = maybe_relu((a @ w) [* scale] + bias [+ residual]) via one Pallas call.

    Operands are cast to bf16 (MXU-native), accumulation is f32 in a VMEM scratch,
    all dims are padded to tile-aligned sizes (lane-dense stores) and sliced back.
    """
    M, K = a.shape
    K2, N = w.shape
    assert K == K2

    Mp = _round_up(M, 8)
    Kp = _round_up(K, 128)
    Np = _round_up(N, 128)

    tm = _pick_tile(Mp, 256, 8)
    tk = _pick_tile(Kp, 1024, 128)
    tn = _pick_tile(Np, 256, 128)

    a_p = jnp.pad(a.astype(jnp.bfloat16), ((0, Mp - M), (0, Kp - K)))
    w_p = jnp.pad(w.astype(jnp.bfloat16), ((0, Kp - K), (0, Np - N)))
    b_p = jnp.pad(bias.astype(jnp.float32).reshape(1, N), ((0, 0), (0, Np - N)))

    inputs = [a_p, w_p]
    in_specs = [
        pl.BlockSpec((tm, tk), lambda i, j, k: (i, k)),
        pl.BlockSpec((tk, tn), lambda i, j, k: (k, j)),
    ]
    bytes_accessed = a_p.size * 2 + w_p.size * 2 + Mp * Np * 4 + 2 * Np * 4

    if scale is not None:
        s_p = jnp.pad(
            scale.astype(jnp.float32).reshape(1, N), ((0, 0), (0, Np - N))
        )
        inputs.append(s_p)
        in_specs.append(pl.BlockSpec((1, tn), lambda i, j, k: (0, j)))

    inputs.append(b_p)
    in_specs.append(pl.BlockSpec((1, tn), lambda i, j, k: (0, j)))

    if residual is not None:
        r_p = jnp.pad(
            residual.astype(jnp.float32), ((0, Mp - M), (0, Np - N))
        )
        inputs.append(r_p)
        in_specs.append(pl.BlockSpec((tm, tn), lambda i, j, k: (i, j)))
        bytes_accessed += r_p.size * 4

    kernel = _make_mm_kernel(relu, residual is not None, scale is not None)
    grid = (Mp // tm, Np // tn, Kp // tk)

    out = pl.pallas_call(
        kernel,
        out_shape=jax.ShapeDtypeStruct((Mp, Np), jnp.float32),
        grid=grid,
        in_specs=in_specs,
        out_specs=pl.BlockSpec((tm, tn), lambda i, j, k: (i, j)),
        scratch_shapes=[pltpu.VMEM((tm, tn), jnp.float32)],
        compiler_params=pltpu.CompilerParams(
            dimension_semantics=("parallel", "parallel", "arbitrary"),
            vmem_limit_bytes=48 << 20,  # <= v7x's 64 MiB physical VMEM
        ),
        cost_estimate=pl.CostEstimate(
            flops=2 * Mp * Np * Kp,
            transcendentals=0,
            bytes_accessed=bytes_accessed,
        ),
    )(*inputs)
    return out[:M, :N]


# ----------------------------------------------------------------------------
# Conv helpers (im2col is glue; the matmul runs in the Pallas kernel above)
# ----------------------------------------------------------------------------
def _im2col(x_nhwc, kh, kw, stride, pad):
    x = jnp.pad(x_nhwc, ((0, 0), (pad, pad), (pad, pad), (0, 0)))
    B, H, W, C = x.shape
    oh = (H - kh) // stride + 1
    ow = (W - kw) // stride + 1
    patches = []
    for i in range(kh):
        for j in range(kw):
            patches.append(
                x[:, i : i + stride * oh : stride, j : j + stride * ow : stride, :]
            )
    patches = jnp.concatenate(patches, axis=-1)  # (B, oh, ow, kh*kw*C)
    return patches.reshape(B * oh * ow, kh * kw * C), oh, ow


def conv_bn(x_nhwc, w_flat, kh, kw, stride, pad, scale, bias, relu=False,
            residual=None):
    # Emit im2col patches in bf16 (halves the HBM round-trip of the glue).
    a, oh, ow = _im2col(x_nhwc.astype(jnp.bfloat16), kh, kw, stride, pad)
    B = x_nhwc.shape[0]
    res_flat = None
    if residual is not None:
        res_flat = residual.reshape(B * oh * ow, residual.shape[-1])
    out = matmul_affine(a, w_flat, bias, scale=scale, residual=res_flat, relu=relu)
    return out.reshape(B, oh, ow, -1)


def maxpool_3x3_s2_p1(x_nhwc):
    return jax.lax.reduce_window(
        x_nhwc,
        -jnp.inf,
        jax.lax.max,
        window_dimensions=(1, 3, 3, 1),
        window_strides=(1, 2, 2, 1),
        padding=((0, 0), (1, 1), (1, 1), (0, 0)),
    )


# ----------------------------------------------------------------------------
# Deterministic parameter init
# ----------------------------------------------------------------------------
def init_conv(key, cin, cout, kh, kw):
    # stored flattened as (kh*kw*cin, cout), matching im2col (i, j, c) ordering
    w = jax.random.normal(key, (kh, kw, cin, cout), dtype=jnp.float32) * 0.05
    return w.reshape(kh * kw * cin, cout)


def init_bn(key, c, eps=1e-5):
    k1, k2, k3, k4 = jax.random.split(key, 4)
    gamma = jax.random.uniform(k1, (c,), minval=0.8, maxval=1.2)
    beta = jax.random.normal(k2, (c,)) * 0.1
    mean = jax.random.normal(k3, (c,)) * 0.1
    var = jax.random.uniform(k4, (c,), minval=0.5, maxval=1.5)
    scale = gamma / jnp.sqrt(var + eps)
    bias = beta - mean * scale
    return scale.astype(jnp.float32), bias.astype(jnp.float32)


def init_basic_block(key, cin, cout, stride):
    keys = jax.random.split(key, 6)
    p = {
        "conv1_w": init_conv(keys[0], cin, cout, 3, 3),
        "bn1": init_bn(keys[1], cout),
        "conv2_w": init_conv(keys[2], cout, cout, 3, 3),
        "bn2": init_bn(keys[3], cout),
    }
    if stride != 1 or cin != cout:  # expansion = 1 for BasicBlock
        p["sc_w"] = init_conv(keys[4], cin, cout, 1, 1)
        p["sc_bn"] = init_bn(keys[5], cout)
    return p


def init_backbone(key, in_channels, layers=(1, 1, 1, 1)):
    keys = jax.random.split(key, 3)
    p = {
        "conv1_w": init_conv(keys[0], in_channels, 64, 7, 7),
        "bn1": init_bn(keys[1], 64),
        "layers": [],
    }
    block_keys = jax.random.split(keys[2], sum(layers))
    idx = 0
    in_ch = 64
    for out_ch, n, stride in zip([64, 128, 256, 512], layers, [1, 2, 2, 2]):
        blocks = []
        for b in range(n):
            s = stride if b == 0 else 1
            blocks.append(init_basic_block(block_keys[idx], in_ch, out_ch, s))
            idx += 1
            in_ch = out_ch
        p["layers"].append(blocks)
    return p


# ----------------------------------------------------------------------------
# Forward passes (eval mode, quantization disabled -> forward_vanilla path)
# ----------------------------------------------------------------------------
def basic_block_fwd(x, p, stride):
    out = conv_bn(x, p["conv1_w"], 3, 3, stride, 1, *p["bn1"], relu=True)
    # Dropout2d in eval mode -> identity.
    if "sc_w" in p:
        sc = conv_bn(x, p["sc_w"], 1, 1, stride, 0, *p["sc_bn"], relu=False)
    else:
        sc = x
    # out = relu(bn2(conv2(out)) + shortcut(x)) fused in one Pallas call.
    out = conv_bn(out, p["conv2_w"], 3, 3, 1, 1, *p["bn2"], relu=True, residual=sc)
    return out


def backbone_fwd(x_nchw, p):
    x = jnp.transpose(x_nchw, (0, 2, 3, 1)).astype(jnp.float32)  # NCHW -> NHWC
    x = conv_bn(x, p["conv1_w"], 7, 7, 2, 3, *p["bn1"], relu=True)
    x = maxpool_3x3_s2_p1(x)
    for li, blocks in enumerate(p["layers"]):
        layer_stride = 1 if li == 0 else 2
        for b, bp in enumerate(blocks):
            s = layer_stride if b == 0 else 1
            x = basic_block_fwd(x, bp, s)
    # AdaptiveAvgPool2d((1,1)) + flatten -> (B, 512)
    return jnp.mean(x, axis=(1, 2))


def resnet_forward(freq_x, params, locations, modalities, class_head=True):
    loc_feats = {}
    for loc in locations:
        mod_feats = []
        for mod in modalities:
            mod_feats.append(
                backbone_fwd(freq_x[loc][mod], params["backbones"][loc][mod])
            )
        loc_feats[loc] = jnp.mean(jnp.stack(mod_feats, axis=1), axis=1)
    # single location -> no loc fusion layer
    final_feature = loc_feats[locations[0]]
    # FC head: no BN scale (bias only); outputs padded to 128 lanes inside
    # matmul_affine and sliced back (lane-dense stores).
    sample_features = matmul_affine(
        final_feature, params["fc1_w"], params["fc1_b"], relu=True
    )
    if not class_head:
        return sample_features, None
    logits = matmul_affine(
        sample_features, params["fc2_w"], params["fc2_b"], relu=False
    )
    return logits, None


# ----------------------------------------------------------------------------
# Main
# ----------------------------------------------------------------------------
if __name__ == "__main__":
    locations = ("loc1",)
    modalities = ("mod1", "mod2")
    in_channels = {"mod1": 4, "mod2": 4}
    layers_cfg = (1, 1, 1, 1)
    fc_dim = 32
    num_classes = 7
    batch = 2
    spatial = 16

    root = jax.random.PRNGKey(0)
    k_data, k_params = jax.random.split(root)

    # deterministic inputs: freq_x[loc][mod] is NCHW like PyTorch
    freq_x = {}
    dkeys = jax.random.split(k_data, len(locations) * len(modalities))
    di = 0
    for loc in locations:
        freq_x[loc] = {}
        for mod in modalities:
            freq_x[loc][mod] = jax.random.normal(
                dkeys[di], (batch, in_channels[mod], spatial, spatial),
                dtype=jnp.float32,
            )
            di += 1

    # deterministic parameters
    pkeys = jax.random.split(k_params, len(locations) * len(modalities) + 2)
    params = {"backbones": {}}
    pi = 0
    for loc in locations:
        params["backbones"][loc] = {}
        for mod in modalities:
            params["backbones"][loc][mod] = init_backbone(
                pkeys[pi], in_channels[mod], layers_cfg
            )
            pi += 1
    kw1, kb1 = jax.random.split(pkeys[pi], 2)
    kw2, kb2 = jax.random.split(pkeys[pi + 1], 2)
    params["fc1_w"] = jax.random.normal(kw1, (512, fc_dim), dtype=jnp.float32) * 0.05
    params["fc1_b"] = jax.random.normal(kb1, (fc_dim,), dtype=jnp.float32) * 0.05
    params["fc2_w"] = jax.random.normal(kw2, (fc_dim, num_classes),
                                        dtype=jnp.float32) * 0.05
    params["fc2_b"] = jax.random.normal(kb2, (num_classes,), dtype=jnp.float32) * 0.05

    # quick numerical sanity check of the fused kernel (bf16 operands, f32 acc)
    ck = jax.random.split(root, 5)
    ca = jax.random.normal(ck[0], (64, 160), dtype=jnp.float32)
    cw = jax.random.normal(ck[1], (160, 96), dtype=jnp.float32) * 0.1
    cs = jax.random.uniform(ck[2], (96,), minval=0.5, maxval=1.5)
    cb = jax.random.normal(ck[3], (96,)) * 0.1
    got = matmul_affine(ca, cw, cb, scale=cs, relu=True)
    want = jnp.maximum(ca @ cw * cs + cb, 0.0)
    assert jnp.allclose(got, want, rtol=5e-2, atol=5e-2), "matmul_affine mismatch"

    # jit the whole forward so glue ops fuse and dispatch overhead amortizes
    fwd = jax.jit(
        functools.partial(
            resnet_forward,
            locations=locations,
            modalities=modalities,
            class_head=True,
        )
    )
    logits, _ = fwd(freq_x, params)
    logits = jax.block_until_ready(logits)
    assert logits.shape == (batch, num_classes), logits.shape
    print("KERNEL_OK")
</pallas_src>

<mosaic_0001>
module attributes {stable_mosaic.version = 11 : i64} {
  func.func @kernel(%arg0: i32, %arg1: i32, %arg2: i32, %arg3: memref<64x256xbf16, #tpu.memory_space<vmem>>, %arg4: memref<256x128xbf16, #tpu.memory_space<vmem>>, %arg5: memref<1x128xf32, #tpu.memory_space<vmem>>, %arg6: memref<1x128xf32, #tpu.memory_space<vmem>>, %arg7: memref<64x128xf32, #tpu.memory_space<vmem>>, %arg8: memref<64x128xf32, #tpu.memory_space<vmem>>) attributes {dimension_semantics = [#tpu.dimension_semantics<parallel>, #tpu.dimension_semantics<parallel>, #tpu.dimension_semantics<arbitrary>], iteration_bounds = array<i64: 1, 1, 1>, scalar_prefetch = 0 : i64, scratch_operands = 1 : i64, tpu.core_type = #tpu.core_type<tc>, window_params = [{transform_indices = @transform_0, window_bounds = array<i64: 64, 256>}, {transform_indices = @transform_1, window_bounds = array<i64: 256, 128>}, {transform_indices = @transform_2, window_bounds = array<i64: 1, 128>}, {transform_indices = @transform_3, window_bounds = array<i64: 1, 128>}, {transform_indices = @transform_4, window_bounds = array<i64: 64, 128>}]} {
    %c0_i32 = arith.constant 0 : i32
    %0 = arith.cmpi eq, %arg2, %c0_i32 : i32
    %1 = arith.extui %0 : i1 to i32
    %c0_i32_0 = arith.constant 0 : i32
    %2 = arith.cmpi ne, %1, %c0_i32_0 : i32
    scf.if %2 {
      %cst_10 = arith.constant 0.000000e+00 : f32
      %12 = vector.broadcast %cst_10 : f32 to vector<64x128xf32>
      %c0_11 = arith.constant 0 : index
      %c0_12 = arith.constant 0 : index
      %13 = vector.load %arg8[%c0_11, %c0_12] : memref<64x128xf32, #tpu.memory_space<vmem>>, vector<64x128xf32>
      tpu.vector_store %arg8[%c0_11, %c0_12], %12 {strides = array<i32>} : memref<64x128xf32, #tpu.memory_space<vmem>>, vector<64x128xf32>,
    } else {
    }
    %c0 = arith.constant 0 : index
    %c0_1 = arith.constant 0 : index
    %3 = vector.load %arg8[%c0, %c0_1] : memref<64x128xf32, #tpu.memory_space<vmem>>, vector<64x128xf32>
    %c0_2 = arith.constant 0 : index
    %c0_3 = arith.constant 0 : index
    %4 = vector.load %arg3[%c0_2, %c0_3] : memref<64x256xbf16, #tpu.memory_space<vmem>>, vector<64x256xbf16>
    %c0_4 = arith.constant 0 : index
    %c0_5 = arith.constant 0 : index
    %5 = vector.load %arg4[%c0_4, %c0_5] : memref<256x128xbf16, #tpu.memory_space<vmem>>, vector<256x128xbf16>
    %cst = arith.constant dense<0.000000e+00> : vector<64x128xf32>
    %6 = tpu.matmul %4, %5, %cst {dimension_numbers = #tpu.dot_dimension_numbers<[1], [0], [0], [1], [0, 0, 1, 1], [], []>} : vector<64x256xbf16>, vector<256x128xbf16>, vector<64x128xf32> -> vector<64x128xf32>
    %7 = arith.addf %3, %6 : vector<64x128xf32>
    %c0_6 = arith.constant 0 : index
    %c0_7 = arith.constant 0 : index
    %8 = vector.load %arg8[%c0_6, %c0_7] : memref<64x128xf32, #tpu.memory_space<vmem>>, vector<64x128xf32>
    tpu.vector_store %arg8[%c0_6, %c0_7], %7 {strides = array<i32>} : memref<64x128xf32, #tpu.memory_space<vmem>>, vector<64x128xf32>,
    %c0_i32_8 = arith.constant 0 : i32
    %9 = arith.cmpi eq, %arg2, %c0_i32_8 : i32
    %10 = arith.extui %9 : i1 to i32
    %c0_i32_9 = arith.constant 0 : i32
    %11 = arith.cmpi ne, %10, %c0_i32_9 : i32
    scf.if %11 {
      %c0_10 = arith.constant 0 : index
      %c0_11 = arith.constant 0 : index
      %12 = vector.load %arg8[%c0_10, %c0_11] : memref<64x128xf32, #tpu.memory_space<vmem>>, vector<64x128xf32>
      %c0_12 = arith.constant 0 : index
      %c0_13 = arith.constant 0 : index
      %13 = vector.load %arg5[%c0_12, %c0_13] : memref<1x128xf32, #tpu.memory_space<vmem>>, vector<1x128xf32>
      %14 = vector.broadcast %13 : vector<1x128xf32> to vector<64x128xf32>
      %15 = arith.mulf %12, %14 : vector<64x128xf32>
      %c0_14 = arith.constant 0 : index
      %c0_15 = arith.constant 0 : index
      %16 = vector.load %arg6[%c0_14, %c0_15] : memref<1x128xf32, #tpu.memory_space<vmem>>, vector<1x128xf32>
      %17 = vector.broadcast %16 : vector<1x128xf32> to vector<64x128xf32>
      %18 = arith.addf %15, %17 : vector<64x128xf32>
      %cst_16 = arith.constant 0.000000e+00 : f32
      %19 = vector.broadcast %cst_16 : f32 to vector<64x128xf32>
      %20 = arith.maximumf %18, %19 : vector<64x128xf32>
      %c0_17 = arith.constant 0 : index
      %c0_18 = arith.constant 0 : index
      %21 = vector.load %arg7[%c0_17, %c0_18] : memref<64x128xf32, #tpu.memory_space<vmem>>, vector<64x128xf32>
      tpu.vector_store %arg7[%c0_17, %c0_18], %20 {strides = array<i32>} : memref<64x128xf32, #tpu.memory_space<vmem>>, vector<64x128xf32>,
    } else {
    }
    return
  }
  func.func @transform_0(%arg0: i32, %arg1: i32, %arg2: i32) -> (i32, i32) {
    %c0_i32 = arith.constant 0 : i32
    return %arg0, %arg2 : i32, i32
  }
  func.func @transform_1(%arg0: i32, %arg1: i32, %arg2: i32) -> (i32, i32) {
    %c0_i32 = arith.constant 0 : i32
    return %arg2, %arg1 : i32, i32
  }
  func.func @transform_2(%arg0: i32, %arg1: i32, %arg2: i32) -> (i32, i32) {
    %c0_i32 = arith.constant 0 : i32
    %c0_i32_0 = arith.constant 0 : i32
    return %c0_i32, %arg1 : i32, i32
  }
  func.func @transform_3(%arg0: i32, %arg1: i32, %arg2: i32) -> (i32, i32) {
    %c0_i32 = arith.constant 0 : i32
    %c0_i32_0 = arith.constant 0 : i32
    return %c0_i32, %arg1 : i32, i32
  }
  func.func @transform_4(%arg0: i32, %arg1: i32, %arg2: i32) -> (i32, i32) {
    %c0_i32 = arith.constant 0 : i32
    return %arg0, %arg1 : i32, i32
  }
}

</mosaic_0001>

<bundles_post_ra>
// kernel: tpu_custom_call.1
= control target key start
LH: loop header
LB: loop body
LE: loop exit
PB: predicated region body
PF: predicated region fallthrough
CT: control target
= control target key end

     0   :  { %9 = vsyncpa [#allocation4], 0  ;;  %s668_s0 = inlined_call_operand.hbm [shape: bf16[64,256], index: 0, kind: input, shape index: {}]   ;;  %s669_s1 = inlined_call_operand.hbm [shape: bf16[256,128], index: 1, kind: input, shape index: {}]   ;;  %s670_s2 = inlined_call_operand.vmem [shape: f32[1,128], index: 2, kind: input, shape index: {}]   ;;  %s671_s3 = inlined_call_operand.vmem [shape: f32[1,128], index: 3, kind: input, shape index: {}]   ;;  %s672_s4 = inlined_call_operand.hbm [shape: f32[64,128], index: 4, kind: output, shape index: {}]  }
   0x1   :  { %10 = vsyncpa [#allocation7], 0 }
   0x2   :  { %11 = vsyncpa [#allocation5], 0  ;;  %s588_s15 = smov [#allocation3]   ;;  %s516_s19 = scalar_lea.hbm %s668_s0, 1024 }
   0x3   :  { %s17_s16 = sshll.u32 %s588_s15, 4  ;;  %p517_p0 = scmp.ne.s32.totalorder %s668_s0, %s516_s19  ;;  %s18_s16 = int_to_ptr.vmem [resolvable:$true] %s17_s16 }
   0x4   :  { %p520_p1 = scmp.lt.u32.totalorder %s516_s19, %s668_s0 }
   0x6   :  { %p522_p2 = pnand %p520_p1, %p517_p0 }
   0x8   :  { %525 = shalt.err (!%p522_p2)
}
   0x9   :  { %s526_s24 = scalar_lea.vmem %s18_s16, 1024  ;;  %p531_p4 = scmp.lt.s32.totalorder %s18_s16, %s18_s16 }
   0xa   :  { %p527_p3 = scmp.ne.s32.totalorder %s18_s16, %s526_s24  ;;  %p532_p5 = scmp.lt.s32.totalorder %s526_s24, %s526_s24 }
   0xc   :  { %p533_p6 = por %p532_p5, %p531_p4 }
   0xe   :  { %p534_p7 = pnand %p533_p6, %p527_p3 }
  0x10   :  { %537 = shalt.err (!%p534_p7)
}
  0x11   :  { %s589_s25 = smov 128   ;;  %s590_s26 = smov 8  }
  0x12   :  { %23 = dma.hbm_to_vmem [thread:$0]  %s668_s0, 1024, %s18_s16, [#allocation4], %s589_s25, %s589_s25, %s590_s26  }
  0x13   :  { %s591_s29 = smov [#allocation6]   ;;  %s538_s7 = scalar_lea.hbm %s669_s1, 2048 }
  0x14   :  { %s29_s30 = sshll.u32 %s591_s29, 4  ;;  %p539_p8 = scmp.ne.s32.totalorder %s669_s1, %s538_s7  ;;  %s30_s30 = int_to_ptr.vmem [resolvable:$true] %s29_s30 }
  0x15   :  { %p542_p9 = scmp.lt.u32.totalorder %s538_s7, %s669_s1 }
  0x17   :  { %p544_p10 = pnand %p542_p9, %p539_p8 }
  0x19   :  { %547 = shalt.err (!%p544_p10)
}
  0x1a   :  { %s548_s12 = scalar_lea.vmem %s30_s30, 2048  ;;  %p553_p12 = scmp.lt.s32.totalorder %s30_s30, %s30_s30 }
  0x1b   :  { %p549_p11 = scmp.ne.s32.totalorder %s30_s30, %s548_s12  ;;  %p554_p13 = scmp.lt.s32.totalorder %s548_s12, %s548_s12 }
  0x1d   :  { %p555_p0 = por %p554_p13, %p553_p12 }
  0x1f   :  { %p556_p1 = pnand %p555_p0, %p549_p11 }
  0x21   :  { %559 = shalt.err (!%p556_p1)
}
  0x22   :  { %s592_s0 = smov 64   ;;  %s593_s13 = smov 4  }
  0x23   :  { %35 = dma.hbm_to_vmem [thread:$0]  %s669_s1, 2048, %s30_s30, [#allocation7], %s592_s0, %s592_s0, %s593_s13  }
  0x24   :  { %582 = dma.done.wait [#allocation4], 1024  }
  0x25   :  { %583 = vsyncadd [#allocation4], 4294966272 }
  0x26   :  { %584 = dma.done.wait [#allocation7], 2048  }
  0x27   :  { %585 = vsyncadd [#allocation7], 4294965248  ;;  %v488_v0 = vld [vmem:[#allocation6 + $0x40] sm:$0xff]   ;;  %v490_v2 = vld [vmem:[#allocation6 + $0x48] sm:$0xff]  }
  0x28   :  { %v489_v1 = vld [vmem:[#allocation6] sm:$0xff]   ;;  %425 = vmatprep.subr.bf16.mxu0 %v488_v0  ;;  %465 = vmatprep.subr.bf16.mxu1 %v488_v0  ;;  %v491_v3 = vld [vmem:[#allocation6 + $0x8] sm:$0xff]   ;;  %v492_v4 = vld [vmem:[#allocation6 + $0x50] sm:$0xff]  }
  0x29   :  { %426 = vmatpush3.bf16.msra.mxu0 %v489_v1  ;;  %473 = vmatpush3.bf16.msra.mxu1 %v489_v1  ;;  %v493_v5 = vld [vmem:[#allocation6 + $0x10] sm:$0xff]   ;;  %v494_v6 = vld [vmem:[#allocation6 + $0x58] sm:$0xff]   ;;  %v496_v8 = vld [vmem:[#allocation6 + $0x60] sm:$0xff]  }
  0x2a   :  { %427 = vmatprep.subr.bf16.mxu0 %v490_v2  ;;  %466 = vmatprep.subr.bf16.mxu1 %v490_v2  ;;  %v495_v7 = vld [vmem:[#allocation6 + $0x18] sm:$0xff]   ;;  %v497_v9 = vld [vmem:[#allocation6 + $0x20] sm:$0xff]   ;;  %v498_v10 = vld [vmem:[#allocation6 + $0x68] sm:$0xff]  }
  0x2b   :  { %v506_v11 = vld [vmem:[#allocation3 + $0x4] ss:$8 sps:$4 sm:$0xff]   ;;  %v500_v14 = vld [vmem:[#allocation6 + $0x70] sm:$0xff]   ;;  %v502_v16 = vld [vmem:[#allocation6 + $0x78] sm:$0xff]  }
  0x2c   :  { %v509_v12 = vld [vmem:[#allocation3 + $0x24] ss:$8 sps:$4 sm:$0xff]   ;;  %275 = vmatprep.mubr.bf16.mxu0 %v506_v11  ;;  %v501_v15 = vld [vmem:[#allocation6 + $0x30] sm:$0xff]   ;;  %v503_v17 = vld [vmem:[#allocation6 + $0x38] sm:$0xff]  }
  0x2d   :  { %428 = vmatpush3.bf16.msra.mxu0 %v491_v3  ;;  %474 = vmatpush3.bf16.msra.mxu1 %v491_v3  ;;  %v499_v13 = vld [vmem:[#allocation6 + $0x28] sm:$0xff]   ;;  %v510_v20 = vld [vmem:[#allocation3 + $0x14] ss:$8 sps:$4 sm:$0xff]   ;;  %v514_v22 = vld [vmem:[#allocation3 + $0x10] ss:$8 sps:$4 sm:$0xff]  }
  0x2e   :  { %429 = vmatprep.subr.bf16.mxu0 %v492_v4  ;;  %467 = vmatprep.subr.bf16.mxu1 %v492_v4  ;;  %v504_v18 = vld [vmem:[#allocation3] ss:$8 sps:$4 sm:$0xff]   ;;  %v512_v21 = vld [vmem:[#allocation3 + $0x34] ss:$8 sps:$4 sm:$0xff]   ;;  %v515_v23 = vld [vmem:[#allocation3 + $0x30] ss:$8 sps:$4 sm:$0xff]  }
  0x2f   :  { %291 = vmatprep.mubr.bf16.mxu1 %v509_v12  ;;  %v507_v19 = vld [vmem:[#allocation3 + $0x20] ss:$8 sps:$4 sm:$0xff]  }
  0x30   :  { %v423_v27 = vld [vmem:[%s670_s2] ss:$0 sm:$0xff]  ;;  %s594_s2 = smov [#allocation8]  }
  0x31   :  { %430 = vmatpush3.bf16.msra.mxu0 %v493_v5  ;;  %475 = vmatpush3.bf16.msra.mxu1 %v493_v5  ;;  %v424_v33 = vld [vmem:[%s671_s3] ss:$0 sm:$0xff]  ;;  %s386_s3 = sshll.u32 %s594_s2, 4  ;;  %s387_s3 = int_to_ptr.vmem [resolvable:$true] %s386_s3 }
  0x32   :  { %431 = vmatprep.subr.bf16.mxu0 %v494_v6  ;;  %468 = vmatprep.subr.bf16.mxu1 %v494_v6  ;;  %s560_s19 = scalar_lea.vmem %s387_s3, 1024  ;;  %p565_p3 = scmp.lt.s32.totalorder %s387_s3, %s387_s3 }
  0x33   :  { %p561_p2 = scmp.ne.s32.totalorder %s387_s3, %s560_s19  ;;  %p566_p4 = scmp.lt.s32.totalorder %s560_s19, %s560_s19 }
  0x35   :  { %432 = vmatpush3.bf16.msra.mxu0 %v495_v7  ;;  %476 = vmatpush3.bf16.msra.mxu1 %v495_v7  ;;  %p567_p5 = por %p566_p4, %p565_p3 }
  0x36   :  { %433 = vmatprep.subr.bf16.mxu0 %v496_v8  ;;  %469 = vmatprep.subr.bf16.mxu1 %v496_v8 }
  0x37   :  { %p568_p6 = pnand %p567_p5, %p561_p2 }
  0x39   :  { %434 = vmatpush3.bf16.msra.mxu0 %v497_v9  ;;  %477 = vmatpush3.bf16.msra.mxu1 %v497_v9 }
  0x3a   :  { %435 = vmatprep.subr.bf16.mxu0 %v498_v10  ;;  %470 = vmatprep.subr.bf16.mxu1 %v498_v10 }
  0x3d   :  { %436 = vmatpush3.bf16.msra.mxu0 %v499_v13  ;;  %478 = vmatpush3.bf16.msra.mxu1 %v499_v13 }
  0x3e   :  { %437 = vmatprep.subr.bf16.mxu0 %v500_v14  ;;  %471 = vmatprep.subr.bf16.mxu1 %v500_v14 }
  0x41   :  { %438 = vmatpush3.bf16.msra.mxu0 %v501_v15  ;;  %479 = vmatpush3.bf16.msra.mxu1 %v501_v15 }
  0x42   :  { %439 = vmatprep.subr.bf16.mxu0 %v502_v16  ;;  %472 = vmatprep.subr.bf16.mxu1 %v502_v16 }
  0x45   :  { %440 = vmatpush3.bf16.msra.mxu0 %v503_v17  ;;  %480 = vmatpush3.bf16.msra.mxu1 %v503_v17 }
  0x48   :  { %276 = vmatmul.mubr.bf16.vlgmr.msra.gmra.mrb[0].mxu0 %v504_v18  ;;  %292 = vmatmul.mubr.bf16.vlgmr.msra.gmra.mrb[0].mxu1 %v507_v19 }
  0x49   :  { %283 = vmatprep.mubr.bf16.mxu0 %v510_v20  ;;  %299 = vmatprep.mubr.bf16.mxu1 %v512_v21 }
  0x50   :  { %284 = vmatmul.mubr.bf16.gmra.mrb[4].mxu0 %v514_v22  ;;  %300 = vmatmul.mubr.bf16.gmra.mrb[4].mxu1 %v515_v23 }
 0x11b   :  { %v441_v24 = vpop.f32.mrb[0].mxu0  ;;  %v453_v25 = vpop.f32.mrb[0].mxu1 }
 0x11c   :  { %v442_v26 = vpop.f32.mrb[1].mxu0  ;;  %v454_v28 = vpop.f32.mrb[1].mxu1 }
 0x11d   :  { %v443_v29 = vadd.f32 %v442_v26, %v441_v24  ;;  %v455_v30 = vadd.f32 %v454_v28, %v453_v25  ;;  %v444_v31 = vpop.f32.mrb[2].mxu0  ;;  %v456_v32 = vpop.f32.mrb[2].mxu1 }
 0x11e   :  { %v445_v34 = vpop.f32.mrb[3].mxu0  ;;  %v457_v35 = vpop.f32.mrb[3].mxu1 }
 0x11f   :  { %v342_v36 = vmul.f32 %v443_v29, %v423_v27  ;;  %v346_v37 = vmul.f32 %v455_v30, %v423_v27  ;;  %v446_v38 = vadd.f32 %v445_v34, %v444_v31  ;;  %v458_v39 = vadd.f32 %v457_v35, %v456_v32 }
 0x121   :  { %v357_v40 = vadd.f32 %v424_v33, %v342_v36  ;;  %v361_v41 = vadd.f32 %v424_v33, %v346_v37  ;;  %v343_v42 = vmul.f32 %v446_v38, %v423_v27  ;;  %v347_v43 = vmul.f32 %v458_v39, %v423_v27 }
 0x123   :  { %v365_v44 = vmax.f32 %v357_v40, 0.0  ;;  %v369_v45 = vmax.f32 %v361_v41, 0.0  ;;  %v358_v46 = vadd.f32 %v424_v33, %v343_v42  ;;  %v362_v47 = vadd.f32 %v424_v33, %v347_v43  ;;  %v447_v48 = vpop.f32.mrb[4].mxu0  ;;  %v459_v49 = vpop.f32.mrb[4].mxu1 }
 0x124   :  { %v448_v50 = vpop.f32.mrb[5].mxu0  ;;  %v460_v51 = vpop.f32.mrb[5].mxu1 }
 0x125   :  { %373 = vst [vmem:[#allocation8] sm:$0xff] %v365_v44  ;;  %377 = vst [vmem:[#allocation8 + $0x20] sm:$0xff] %v369_v45  ;;  %v366_v52 = vmax.f32 %v358_v46, 0.0  ;;  %v370_v53 = vmax.f32 %v362_v47, 0.0  ;;  %v449_v54 = vadd.f32 %v448_v50, %v447_v48  ;;  %v461_v55 = vadd.f32 %v460_v51, %v459_v49  ;;  %v450_v56 = vpop.f32.mrb[6].mxu0  ;;  %v462_v57 = vpop.f32.mrb[6].mxu1 }
 0x126   :  { %v451_v58 = vpop.f32.mrb[7].mxu0  ;;  %v463_v59 = vpop.f32.mrb[7].mxu1 }
 0x127   :  { %374 = vst [vmem:[#allocation8 + $0x8] sm:$0xff] %v366_v52  ;;  %378 = vst [vmem:[#allocation8 + $0x28] sm:$0xff] %v370_v53  ;;  %v344_v60 = vmul.f32 %v449_v54, %v423_v27  ;;  %v348_v61 = vmul.f32 %v461_v55, %v423_v27  ;;  %v452_v62 = vadd.f32 %v451_v58, %v450_v56 }
 0x128   :  { %v464_v63 = vadd.f32 %v463_v59, %v462_v57 }
 0x129   :  { %v359_v0 = vadd.f32 %v424_v33, %v344_v60  ;;  %v363_v1 = vadd.f32 %v424_v33, %v348_v61  ;;  %v345_v2 = vmul.f32 %v452_v62, %v423_v27 }
 0x12a   :  { %v349_v3 = vmul.f32 %v464_v63, %v423_v27 }
 0x12b   :  { %v367_v4 = vmax.f32 %v359_v0, 0.0  ;;  %v371_v5 = vmax.f32 %v363_v1, 0.0  ;;  %v360_v6 = vadd.f32 %v424_v33, %v345_v2 }
 0x12c   :  { %v364_v7 = vadd.f32 %v424_v33, %v349_v3 }
 0x12d   :  { %375 = vst [vmem:[#allocation8 + $0x10] sm:$0xff] %v367_v4  ;;  %379 = vst [vmem:[#allocation8 + $0x30] sm:$0xff] %v371_v5  ;;  %v368_v8 = vmax.f32 %v360_v6, 0.0 }
 0x12e   :  { %v372_v9 = vmax.f32 %v364_v7, 0.0 }
 0x12f   :  { %376 = vst [vmem:[#allocation8 + $0x18] sm:$0xff] %v368_v8 }
 0x130   :  { %380 = vst [vmem:[#allocation8 + $0x38] sm:$0xff] %v372_v9 }
 0x131   :  { %571 = shalt.err (!%p568_p6)
}
 0x132   :  { %s572_s22 = scalar_lea.hbm %s672_s4, 1024 }
 0x133   :  { %p573_p7 = scmp.ne.s32.totalorder %s672_s4, %s572_s22  ;;  %p576_p8 = scmp.lt.u32.totalorder %s572_s22, %s672_s4 }
 0x135   :  { %p578_p9 = pnand %p576_p8, %p573_p7 }
 0x137   :  { %581 = shalt.err (!%p578_p9)
}
 0x138   :  { %392 = dma.vmem_to_hbm [thread:$0]  %s387_s3, 1024, %s672_s4, [#allocation5], %s589_s25, %s589_s25, %s590_s26  }
 0x139   :  { %586 = dma.done.wait [#allocation5], 1024  }
 0x13a   :  { %587 = vsyncadd [#allocation5], 4294966272 }
 0x13b   :  { %396 = vsyncpa [#allocation4], 1 }
 0x13c   :  { %397 = vsyncpa [#allocation7], 1 }
 0x13d   :  { %398 = vsyncpa [#allocation5], 1 }

</bundles_post_ra>
